<compile_context>
chip_gen: v5e
topology: v5e:2x2
jax: 0.10.0
libtpu: 0.0.40
codegen_flags: <defaults>
</compile_context>

<pallas_src>
import jax
import jax.numpy as jnp
from jax import lax
from jax.experimental import pallas as pl
from jax.experimental.pallas import tpu as pltpu

BN_EPS = 1e-5


# ----------------------------- Pallas kernel ------------------------------- #

def _up_double_conv_kernel(mh_ref, x_ref, a1_ref, s1_ref, b1_ref,
                           m2_ref, s2_ref, b2_ref, o_ref):
    """Fused upsample + DoubleConv on one H2-row tile, lane-dense (rows, W*C).

    mh_ref : (tH+4, H)             f32  gathered rows of the H-interp matrix
                                        (circular row halo already folded in)
    x_ref  : (H, W*Cin)            f32  original (pre-upsample) image rows
    a1_ref : (3, W*Cin, W2*Cmid)   bf16 per-ky conv1 matrices (W-interp,
                                        circular x-wrap and all kx taps folded)
    m2_ref : (3, W2*Cmid, W2*Cout) bf16 per-ky conv2 matrices (x-wrap + kx folded)
    s*/b*  : (1, W2*C)             f32  folded BatchNorm scale / bias (tiled per x)
    o_ref  : (tH, W2*Cout)         f32  output rows of this tile
    """
    th, _ = o_ref.shape
    h1 = th + 2                       # conv1 rows needed (1-row halo for conv2)

    # Bilinear H-interpolation: haloed upsampled rows for this tile (f32 MXU).
    u = jnp.dot(mh_ref[...], x_ref[...],
                preferred_element_type=jnp.float32).astype(jnp.bfloat16)

    # conv1 + BN1 + ReLU.  ky is handled by row-shifted slices; acc is
    # initialized by the first dot (no zeros + add).
    z1 = jnp.dot(u[0:h1], a1_ref[0], preferred_element_type=jnp.float32)
    z1 = z1 + jnp.dot(u[1:h1 + 1], a1_ref[1], preferred_element_type=jnp.float32)
    z1 = z1 + jnp.dot(u[2:h1 + 2], a1_ref[2], preferred_element_type=jnp.float32)
    y1 = jnp.maximum(z1 * s1_ref[...] + b1_ref[...], 0.0).astype(jnp.bfloat16)

    # conv2 + BN2 + ReLU on exactly this tile's output rows.
    z2 = jnp.dot(y1[0:th], m2_ref[0], preferred_element_type=jnp.float32)
    z2 = z2 + jnp.dot(y1[1:th + 1], m2_ref[1], preferred_element_type=jnp.float32)
    z2 = z2 + jnp.dot(y1[2:th + 2], m2_ref[2], preferred_element_type=jnp.float32)
    o_ref[...] = jnp.maximum(z2 * s2_ref[...] + b2_ref[...], 0.0).astype(o_ref.dtype)


# ------------------------------ JAX glue ----------------------------------- #

def _interp_matrix_align_corners(n_in, n_out):
    # 1-D interpolation matrix of nn.Upsample(mode='bilinear', align_corners=True).
    if n_in == 1:
        return jnp.ones((n_out, 1), jnp.float32)
    src = jnp.arange(n_out, dtype=jnp.float32) * (n_in - 1) / (n_out - 1)
    i0 = jnp.clip(jnp.floor(src).astype(jnp.int32), 0, n_in - 2)
    frac = src - i0.astype(jnp.float32)
    return (jax.nn.one_hot(i0, n_in, dtype=jnp.float32) * (1.0 - frac)[:, None]
            + jax.nn.one_hot(i0 + 1, n_in, dtype=jnp.float32) * frac[:, None])


def _conv_row_matrices(wt, w_out):
    """(cout, cin, 3, 3) -> (3, w_out*cin, w_out*cout) per-ky matrices of a 3x3
    circular conv applied along rows of width w_out in flattened (x, c) layout.
    The ky row shift is handled by the caller via row-shifted slices."""
    cout, cin, _, _ = wt.shape
    x_out = jnp.arange(w_out)
    mats = []
    for ky in range(3):
        m = jnp.zeros((w_out * cin, w_out * cout), jnp.float32)
        for kx in range(3):
            x_in = (x_out + kx - 1) % w_out                 # circular x wrap
            shift = jax.nn.one_hot(x_in, w_out, dtype=jnp.float32).T  # (x_in, x_out)
            m = m + jnp.kron(shift, wt[:, :, ky, kx].T)     # (cin, cout) per pixel
        mats.append(m)
    return jnp.stack(mats)


def _fold_bn(gamma, beta, mean, var):
    scale = gamma / jnp.sqrt(var + BN_EPS)
    bias = beta - mean * scale
    return scale, bias


def _round_up(x, m):
    return -(-x // m) * m


def _padded_bytes(rows, cols, itemsize):
    # Real VMEM footprint: minor dim padded to 128 lanes, second-minor to
    # 8 (f32) / 16 (bf16) sublanes.
    sub = 8 if itemsize == 4 else 16
    return _round_up(max(rows, 1), sub) * _round_up(max(cols, 1), 128) * itemsize


def _pick_tile_rows(h2, h, wcin, w2cmid, w2cout, budget_bytes=20 << 20):
    # Largest divisor of h2 whose padded per-step footprint (double-buffered
    # pipelined blocks + in-kernel intermediates) fits budget_bytes.  Budget is
    # conservative w.r.t. v7x's 64 MiB VMEM; vmem_limit_bytes is raised so
    # v5e/v6e (128 MiB physical) can use the full budget too.
    best = 1
    for th in range(1, h2 + 1):
        if h2 % th:
            continue
        thp = th + 4
        vmem = (
            2 * _padded_bytes(thp, h, 4)               # mh tile (2 bufs)
            + 2 * _padded_bytes(h, wcin, 4)            # x (resident, 2 bufs)
            + 2 * _padded_bytes(th, w2cout, 4)         # out tile (2 bufs)
            + 2 * 3 * _padded_bytes(wcin, w2cmid, 2)   # a1 (2 bufs)
            + 2 * 3 * _padded_bytes(w2cmid, w2cout, 2) # m2 (2 bufs)
            + _padded_bytes(thp, wcin, 4)              # u f32
            + _padded_bytes(thp, wcin, 2)              # u bf16
            + _padded_bytes(th + 2, w2cmid, 4)         # z1 f32
            + _padded_bytes(th + 2, w2cmid, 2)         # y1 bf16
            + _padded_bytes(th, w2cout, 4)             # z2 f32
        )
        if vmem <= budget_bytes:
            best = th
    return best


def _largest_divisor_leq(n, cap):
    cap = max(1, min(int(cap), n))
    for d in range(cap, 0, -1):
        if n % d == 0:
            return d
    return 1


def up_forward(x_nchw, params, tile_rows=None):
    (c1w, g1, be1, m1, v1, c2w, g2, be2, m2v, v2) = params
    n, cin, h, w = x_nchw.shape
    cmid, cout = c1w.shape[0], c2w.shape[0]
    h2, w2 = 2 * h, 2 * w

    if tile_rows is None:
        th = _pick_tile_rows(h2, h, w * cin, w2 * cmid, w2 * cout)
    else:
        th = _largest_divisor_leq(h2, tile_rows)
    nt = h2 // th                     # grid = (N, nt): N even in the test, so
                                      # both v7x TensorCores get balanced work.

    # Original image, lane-dense (rows, W*Cin) flattened layout; read once per
    # sample (block index constant across the row-tile axis).
    x_flat = jnp.transpose(x_nchw, (0, 2, 3, 1)).reshape(n, h, w * cin)
    x_flat = x_flat.astype(jnp.float32)

    # Per-tile rows of the H-interp matrix with the 2-row circular halo baked in
    # (exactly PyTorch's 'circular' padding behaviour along H).
    mh = _interp_matrix_align_corners(h, h2)                        # (h2, h)
    rows = (jnp.arange(nt)[:, None] * th + jnp.arange(th + 4)[None, :] - 2) % h2
    mh_tiled = mh[rows]                                             # (nt, th+4, h)

    # Fold W-interp + circular x-wrap + kx taps into per-ky conv matrices.
    mw = _interp_matrix_align_corners(w, w2)                        # (w2, w)
    mwc = jnp.kron(mw.T, jnp.eye(cin, dtype=jnp.float32))           # (w*cin, w2*cin)
    m1 = _conv_row_matrices(c1w, w2)                                # (3, w2*cin, w2*cmid)
    a1 = jnp.einsum('ij,kjl->kil', mwc, m1).astype(jnp.bfloat16)    # (3, w*cin, w2*cmid)
    m2 = _conv_row_matrices(c2w, w2).astype(jnp.bfloat16)           # (3, w2*cmid, w2*cout)

    s1, b1 = _fold_bn(g1, be1, m1v := m1 and m1 or m1, v1) if False else _fold_bn(g1, be1, params[3], v1)
    s2, b2 = _fold_bn(g2, be2, m2v, v2)
    s1f = jnp.tile(s1, w2)[None, :]                                 # (1, w2*cmid)
    b1f = jnp.tile(b1, w2)[None, :]
    s2f = jnp.tile(s2, w2)[None, :]                                 # (1, w2*cout)
    b2f = jnp.tile(b2, w2)[None, :]

    out = pl.pallas_call(
        _up_double_conv_kernel,
        out_shape=jax.ShapeDtypeStruct((n, nt, th, w2 * cout), jnp.float32),
        grid=(n, nt),
        in_specs=[
            pl.BlockSpec((None, th + 4, h), lambda i, j: (j, 0, 0)),
            pl.BlockSpec((None, h, w * cin), lambda i, j: (i, 0, 0)),
            pl.BlockSpec((3, w * cin, w2 * cmid), lambda i, j: (0, 0, 0)),
            pl.BlockSpec((1, w2 * cmid), lambda i, j: (0, 0)),
            pl.BlockSpec((1, w2 * cmid), lambda i, j: (0, 0)),
            pl.BlockSpec((3, w2 * cmid, w2 * cout), lambda i, j: (0, 0, 0)),
            pl.BlockSpec((1, w2 * cout), lambda i, j: (0, 0)),
            pl.BlockSpec((1, w2 * cout), lambda i, j: (0, 0)),
        ],
        out_specs=pl.BlockSpec((None, None, th, w2 * cout),
                               lambda i, j: (i, j, 0, 0)),
        compiler_params=pltpu.CompilerParams(
            dimension_semantics=("parallel", "parallel"),
            vmem_limit_bytes=48 * 1024 * 1024),
    )(mh_tiled, x_flat, a1, s1f, b1f, m2, s2f, b2f)

    out = out.reshape(n, h2, w2, cout)            # contiguous reshape, no copy
    return jnp.transpose(out, (0, 3, 1, 2))       # NHWC -> NCHW


# -------------------------- reference & params ------------------------------ #

def bilinear_upsample_x2(x_nhwc):
    n, h, w, c = x_nhwc.shape
    mh = _interp_matrix_align_corners(h, 2 * h)
    mw = _interp_matrix_align_corners(w, 2 * w)
    y = jnp.einsum('oh,nhwc->nowc', mh, x_nhwc, precision=lax.Precision.HIGHEST)
    y = jnp.einsum('pw,nowc->nopc', mw, y, precision=lax.Precision.HIGHEST)
    return y


def up_reference(x_nchw, params):
    (c1w, g1, be1, m1, v1, c2w, g2, be2, m2, v2) = params
    y = jnp.transpose(x_nchw, (0, 2, 3, 1))
    y = bilinear_upsample_x2(y)

    def conv_bn_relu(hh, wt, gamma, beta, mean, var):
        hp = jnp.pad(hh, ((0, 0), (1, 1), (1, 1), (0, 0)), mode='wrap')
        z = lax.conv_general_dilated(
            hp, jnp.transpose(wt, (2, 3, 1, 0)), (1, 1), 'VALID',
            dimension_numbers=('NHWC', 'HWIO', 'NHWC'),
            precision=lax.Precision.HIGHEST)
        z = (z - mean) / jnp.sqrt(var + BN_EPS) * gamma + beta
        return jnp.maximum(z, 0.0)

    y = conv_bn_relu(y, c1w, g1, be1, m1, v1)
    y = conv_bn_relu(y, c2w, g2, be2, m2, v2)
    return jnp.transpose(y, (0, 3, 1, 2))


def init_params(key, in_channels, out_channels):
    mid = out_channels   # DoubleConv default: mid_channels = out_channels
    ks = jax.random.split(key, 10)
    conv1_w = 0.1 * jax.random.normal(ks[0], (mid, in_channels, 3, 3), jnp.float32)
    bn1_g = 1.0 + 0.1 * jax.random.normal(ks[1], (mid,), jnp.float32)
    bn1_b = 0.1 * jax.random.normal(ks[2], (mid,), jnp.float32)
    bn1_m = 0.1 * jax.random.normal(ks[3], (mid,), jnp.float32)
    bn1_v = 0.5 + jax.random.uniform(ks[4], (mid,), jnp.float32)
    conv2_w = 0.1 * jax.random.normal(ks[5], (out_channels, mid, 3, 3), jnp.float32)
    bn2_g = 1.0 + 0.1 * jax.random.normal(ks[6], (out_channels,), jnp.float32)
    bn2_b = 0.1 * jax.random.normal(ks[7], (out_channels,), jnp.float32)
    bn2_m = 0.1 * jax.random.normal(ks[8], (out_channels,), jnp.float32)
    bn2_v = 0.5 + jax.random.uniform(ks[9], (out_channels,), jnp.float32)
    return (conv1_w, bn1_g, bn1_b, bn1_m, bn1_v,
            conv2_w, bn2_g, bn2_b, bn2_m, bn2_v)


if __name__ == "__main__":
    key = jax.random.PRNGKey(0)
    k_param, k_x = jax.random.split(key)

    N, Cin, H, W = 2, 4, 16, 16
    Cout = 4
    params = init_params(k_param, Cin, Cout)
    x = jax.random.normal(k_x, (N, Cin, H, W), jnp.float32)

    ref = jax.block_until_ready(up_reference(x, params))
    scale = float(jnp.max(jnp.abs(ref)))
    tol = 3e-2 + 3e-2 * scale   # bf16 activations/weights through two convs

    # 1) tile_rows=8 -> 4 row tiles per sample: exercises interior halos and
    #    the circular wrap at the top/bottom tiles.
    out_tiled = jax.block_until_ready(up_forward(x, params, tile_rows=8))
    assert out_tiled.shape == (N, Cout, 2 * H, 2 * W), out_tiled.shape
    err = float(jnp.max(jnp.abs(out_tiled - ref)))
    assert err < tol, f"tiled: max abs err {err} (ref max {scale})"

    # 2) default (padded-aware auto tile -> whole-image tile here).
    out_auto = jax.block_until_ready(up_forward(x, params))
    err = float(jnp.max(jnp.abs(out_auto - ref)))
    assert err < tol, f"auto: max abs err {err} (ref max {scale})"

    print("KERNEL_OK")
</pallas_src>

<mosaic_0001>
module attributes {stable_mosaic.version = 11 : i64} {
  func.func @_up_double_conv_kernel(%arg0: i32, %arg1: i32, %arg2: memref<1x12x16xf32, #tpu.memory_space<vmem>>, %arg3: memref<1x16x64xf32, #tpu.memory_space<vmem>>, %arg4: memref<3x64x128xbf16, #tpu.memory_space<vmem>>, %arg5: memref<1x128xf32, #tpu.memory_space<vmem>>, %arg6: memref<1x128xf32, #tpu.memory_space<vmem>>, %arg7: memref<3x128x128xbf16, #tpu.memory_space<vmem>>, %arg8: memref<1x128xf32, #tpu.memory_space<vmem>>, %arg9: memref<1x128xf32, #tpu.memory_space<vmem>>, %arg10: memref<1x1x8x128xf32, #tpu.memory_space<vmem>>) attributes {dimension_semantics = [#tpu.dimension_semantics<parallel>, #tpu.dimension_semantics<parallel>], iteration_bounds = array<i64: 2, 4>, scalar_prefetch = 0 : i64, scratch_operands = 0 : i64, tpu.core_type = #tpu.core_type<tc>, window_params = [{transform_indices = @transform_0, window_bounds = array<i64: 1, 12, 16>}, {transform_indices = @transform_1, window_bounds = array<i64: 1, 16, 64>}, {pipeline_mode = #tpu.pipeline_mode<synchronous>, transform_indices = @transform_2, window_bounds = array<i64: 3, 64, 128>}, {pipeline_mode = #tpu.pipeline_mode<synchronous>, transform_indices = @transform_3, window_bounds = array<i64: 1, 128>}, {pipeline_mode = #tpu.pipeline_mode<synchronous>, transform_indices = @transform_4, window_bounds = array<i64: 1, 128>}, {pipeline_mode = #tpu.pipeline_mode<synchronous>, transform_indices = @transform_5, window_bounds = array<i64: 3, 128, 128>}, {pipeline_mode = #tpu.pipeline_mode<synchronous>, transform_indices = @transform_6, window_bounds = array<i64: 1, 128>}, {pipeline_mode = #tpu.pipeline_mode<synchronous>, transform_indices = @transform_7, window_bounds = array<i64: 1, 128>}, {transform_indices = @transform_8, window_bounds = array<i64: 1, 1, 8, 128>}]} {
    %c0 = arith.constant 0 : index
    %c0_0 = arith.constant 0 : index
    %c0_1 = arith.constant 0 : index
    %0 = vector.load %arg2[%c0, %c0_0, %c0_1] : memref<1x12x16xf32, #tpu.memory_space<vmem>>, vector<1x12x16xf32>
    %1 = vector.shape_cast %0 : vector<1x12x16xf32> to vector<12x16xf32>
    %c0_2 = arith.constant 0 : index
    %c0_3 = arith.constant 0 : index
    %c0_4 = arith.constant 0 : index
    %2 = vector.load %arg3[%c0_2, %c0_3, %c0_4] : memref<1x16x64xf32, #tpu.memory_space<vmem>>, vector<1x16x64xf32>
    %3 = vector.shape_cast %2 : vector<1x16x64xf32> to vector<16x64xf32>
    %cst = arith.constant dense<0.000000e+00> : vector<12x64xf32>
    %4 = tpu.matmul %1, %3, %cst {dimension_numbers = #tpu.dot_dimension_numbers<[1], [0], [0], [1], [0, 0, 1, 1], [], []>} : vector<12x16xf32>, vector<16x64xf32>, vector<12x64xf32> -> vector<12x64xf32>
    %5 = arith.truncf %4 : vector<12x64xf32> to vector<12x64xbf16>
    %6 = vector.extract_strided_slice %5 {offsets = [0, 0], sizes = [10, 64], strides = [1, 1]} : vector<12x64xbf16> to vector<10x64xbf16>
    %c0_5 = arith.constant 0 : index
    %c0_6 = arith.constant 0 : index
    %c0_7 = arith.constant 0 : index
    %7 = vector.load %arg4[%c0_5, %c0_6, %c0_7] : memref<3x64x128xbf16, #tpu.memory_space<vmem>>, vector<1x64x128xbf16>
    %8 = vector.shape_cast %7 : vector<1x64x128xbf16> to vector<64x128xbf16>
    %cst_8 = arith.constant dense<0.000000e+00> : vector<10x128xf32>
    %9 = tpu.matmul %6, %8, %cst_8 {dimension_numbers = #tpu.dot_dimension_numbers<[1], [0], [0], [1], [0, 0, 1, 1], [], []>} : vector<10x64xbf16>, vector<64x128xbf16>, vector<10x128xf32> -> vector<10x128xf32>
    %10 = vector.extract_strided_slice %5 {offsets = [1, 0], sizes = [10, 64], strides = [1, 1]} : vector<12x64xbf16> to vector<10x64xbf16>
    %c1 = arith.constant 1 : index
    %c0_9 = arith.constant 0 : index
    %c0_10 = arith.constant 0 : index
    %11 = vector.load %arg4[%c1, %c0_9, %c0_10] : memref<3x64x128xbf16, #tpu.memory_space<vmem>>, vector<1x64x128xbf16>
    %12 = vector.shape_cast %11 : vector<1x64x128xbf16> to vector<64x128xbf16>
    %cst_11 = arith.constant dense<0.000000e+00> : vector<10x128xf32>
    %13 = tpu.matmul %10, %12, %cst_11 {dimension_numbers = #tpu.dot_dimension_numbers<[1], [0], [0], [1], [0, 0, 1, 1], [], []>} : vector<10x64xbf16>, vector<64x128xbf16>, vector<10x128xf32> -> vector<10x128xf32>
    %14 = arith.addf %9, %13 : vector<10x128xf32>
    %15 = vector.extract_strided_slice %5 {offsets = [2, 0], sizes = [10, 64], strides = [1, 1]} : vector<12x64xbf16> to vector<10x64xbf16>
    %c2 = arith.constant 2 : index
    %c0_12 = arith.constant 0 : index
    %c0_13 = arith.constant 0 : index
    %16 = vector.load %arg4[%c2, %c0_12, %c0_13] : memref<3x64x128xbf16, #tpu.memory_space<vmem>>, vector<1x64x128xbf16>
    %17 = vector.shape_cast %16 : vector<1x64x128xbf16> to vector<64x128xbf16>
    %cst_14 = arith.constant dense<0.000000e+00> : vector<10x128xf32>
    %18 = tpu.matmul %15, %17, %cst_14 {dimension_numbers = #tpu.dot_dimension_numbers<[1], [0], [0], [1], [0, 0, 1, 1], [], []>} : vector<10x64xbf16>, vector<64x128xbf16>, vector<10x128xf32> -> vector<10x128xf32>
    %19 = arith.addf %14, %18 : vector<10x128xf32>
    %c0_15 = arith.constant 0 : index
    %c0_16 = arith.constant 0 : index
    %20 = vector.load %arg5[%c0_15, %c0_16] : memref<1x128xf32, #tpu.memory_space<vmem>>, vector<1x128xf32>
    %21 = vector.broadcast %20 : vector<1x128xf32> to vector<10x128xf32>
    %22 = arith.mulf %19, %21 : vector<10x128xf32>
    %c0_17 = arith.constant 0 : index
    %c0_18 = arith.constant 0 : index
    %23 = vector.load %arg6[%c0_17, %c0_18] : memref<1x128xf32, #tpu.memory_space<vmem>>, vector<1x128xf32>
    %24 = vector.broadcast %23 : vector<1x128xf32> to vector<10x128xf32>
    %25 = arith.addf %22, %24 : vector<10x128xf32>
    %cst_19 = arith.constant 0.000000e+00 : f32
    %26 = vector.broadcast %cst_19 : f32 to vector<10x128xf32>
    %27 = arith.maximumf %25, %26 : vector<10x128xf32>
    %28 = arith.truncf %27 : vector<10x128xf32> to vector<10x128xbf16>
    %29 = vector.extract_strided_slice %28 {offsets = [0, 0], sizes = [8, 128], strides = [1, 1]} : vector<10x128xbf16> to vector<8x128xbf16>
    %c0_20 = arith.constant 0 : index
    %c0_21 = arith.constant 0 : index
    %c0_22 = arith.constant 0 : index
    %30 = vector.load %arg7[%c0_20, %c0_21, %c0_22] : memref<3x128x128xbf16, #tpu.memory_space<vmem>>, vector<1x128x128xbf16>
    %31 = vector.shape_cast %30 : vector<1x128x128xbf16> to vector<128x128xbf16>
    %cst_23 = arith.constant dense<0.000000e+00> : vector<8x128xf32>
    %32 = tpu.matmul %29, %31, %cst_23 {dimension_numbers = #tpu.dot_dimension_numbers<[1], [0], [0], [1], [0, 0, 1, 1], [], []>} : vector<8x128xbf16>, vector<128x128xbf16>, vector<8x128xf32> -> vector<8x128xf32>
    %33 = vector.extract_strided_slice %28 {offsets = [1, 0], sizes = [8, 128], strides = [1, 1]} : vector<10x128xbf16> to vector<8x128xbf16>
    %c1_24 = arith.constant 1 : index
    %c0_25 = arith.constant 0 : index
    %c0_26 = arith.constant 0 : index
    %34 = vector.load %arg7[%c1_24, %c0_25, %c0_26] : memref<3x128x128xbf16, #tpu.memory_space<vmem>>, vector<1x128x128xbf16>
    %35 = vector.shape_cast %34 : vector<1x128x128xbf16> to vector<128x128xbf16>
    %cst_27 = arith.constant dense<0.000000e+00> : vector<8x128xf32>
    %36 = tpu.matmul %33, %35, %cst_27 {dimension_numbers = #tpu.dot_dimension_numbers<[1], [0], [0], [1], [0, 0, 1, 1], [], []>} : vector<8x128xbf16>, vector<128x128xbf16>, vector<8x128xf32> -> vector<8x128xf32>
    %37 = arith.addf %32, %36 : vector<8x128xf32>
    %38 = vector.extract_strided_slice %28 {offsets = [2, 0], sizes = [8, 128], strides = [1, 1]} : vector<10x128xbf16> to vector<8x128xbf16>
    %c2_28 = arith.constant 2 : index
    %c0_29 = arith.constant 0 : index
    %c0_30 = arith.constant 0 : index
    %39 = vector.load %arg7[%c2_28, %c0_29, %c0_30] : memref<3x128x128xbf16, #tpu.memory_space<vmem>>, vector<1x128x128xbf16>
    %40 = vector.shape_cast %39 : vector<1x128x128xbf16> to vector<128x128xbf16>
    %cst_31 = arith.constant dense<0.000000e+00> : vector<8x128xf32>
    %41 = tpu.matmul %38, %40, %cst_31 {dimension_numbers = #tpu.dot_dimension_numbers<[1], [0], [0], [1], [0, 0, 1, 1], [], []>} : vector<8x128xbf16>, vector<128x128xbf16>, vector<8x128xf32> -> vector<8x128xf32>
    %42 = arith.addf %37, %41 : vector<8x128xf32>
    %c0_32 = arith.constant 0 : index
    %c0_33 = arith.constant 0 : index
    %43 = vector.load %arg8[%c0_32, %c0_33] : memref<1x128xf32, #tpu.memory_space<vmem>>, vector<1x128xf32>
    %44 = vector.broadcast %43 : vector<1x128xf32> to vector<8x128xf32>
    %45 = arith.mulf %42, %44 : vector<8x128xf32>
    %c0_34 = arith.constant 0 : index
    %c0_35 = arith.constant 0 : index
    %46 = vector.load %arg9[%c0_34, %c0_35] : memref<1x128xf32, #tpu.memory_space<vmem>>, vector<1x128xf32>
    %47 = vector.broadcast %46 : vector<1x128xf32> to vector<8x128xf32>
    %48 = arith.addf %45, %47 : vector<8x128xf32>
    %cst_36 = arith.constant 0.000000e+00 : f32
    %49 = vector.broadcast %cst_36 : f32 to vector<8x128xf32>
    %50 = arith.maximumf %48, %49 : vector<8x128xf32>
    %c0_37 = arith.constant 0 : index
    %c0_38 = arith.constant 0 : index
    %c0_39 = arith.constant 0 : index
    %c0_40 = arith.constant 0 : index
    %51 = vector.load %arg10[%c0_37, %c0_38, %c0_39, %c0_40] : memref<1x1x8x128xf32, #tpu.memory_space<vmem>>, vector<1x1x8x128xf32>
    %52 = vector.shape_cast %51 : vector<1x1x8x128xf32> to vector<8x128xf32>
    %53 = vector.shape_cast %50 : vector<8x128xf32> to vector<1x1x8x128xf32>
    tpu.vector_store %arg10[%c0_37, %c0_38, %c0_39, %c0_40], %53 {strides = array<i32>} : memref<1x1x8x128xf32, #tpu.memory_space<vmem>>, vector<1x1x8x128xf32>,
    return
  }
  func.func @transform_0(%arg0: i32, %arg1: i32) -> (i32, i32, i32) {
    %c0_i32 = arith.constant 0 : i32
    %c0_i32_0 = arith.constant 0 : i32
    %c0_i32_1 = arith.constant 0 : i32
    return %arg1, %c0_i32, %c0_i32_0 : i32, i32, i32
  }
  func.func @transform_1(%arg0: i32, %arg1: i32) -> (i32, i32, i32) {
    %c0_i32 = arith.constant 0 : i32
    %c0_i32_0 = arith.constant 0 : i32
    %c0_i32_1 = arith.constant 0 : i32
    return %arg0, %c0_i32, %c0_i32_0 : i32, i32, i32
  }
  func.func @transform_2(%arg0: i32, %arg1: i32) -> (i32, i32, i32) {
    %c0_i32 = arith.constant 0 : i32
    %c0_i32_0 = arith.constant 0 : i32
    %c0_i32_1 = arith.constant 0 : i32
    %c0_i32_2 = arith.constant 0 : i32
    return %c0_i32, %c0_i32_0, %c0_i32_1 : i32, i32, i32
  }
  func.func @transform_3(%arg0: i32, %arg1: i32) -> (i32, i32) {
    %c0_i32 = arith.constant 0 : i32
    %c0_i32_0 = arith.constant 0 : i32
    %c0_i32_1 = arith.constant 0 : i32
    return %c0_i32, %c0_i32_0 : i32, i32
  }
  func.func @transform_4(%arg0: i32, %arg1: i32) -> (i32, i32) {
    %c0_i32 = arith.constant 0 : i32
    %c0_i32_0 = arith.constant 0 : i32
    %c0_i32_1 = arith.constant 0 : i32
    return %c0_i32, %c0_i32_0 : i32, i32
  }
  func.func @transform_5(%arg0: i32, %arg1: i32) -> (i32, i32, i32) {
    %c0_i32 = arith.constant 0 : i32
    %c0_i32_0 = arith.constant 0 : i32
    %c0_i32_1 = arith.constant 0 : i32
    %c0_i32_2 = arith.constant 0 : i32
    return %c0_i32, %c0_i32_0, %c0_i32_1 : i32, i32, i32
  }
  func.func @transform_6(%arg0: i32, %arg1: i32) -> (i32, i32) {
    %c0_i32 = arith.constant 0 : i32
    %c0_i32_0 = arith.constant 0 : i32
    %c0_i32_1 = arith.constant 0 : i32
    return %c0_i32, %c0_i32_0 : i32, i32
  }
  func.func @transform_7(%arg0: i32, %arg1: i32) -> (i32, i32) {
    %c0_i32 = arith.constant 0 : i32
    %c0_i32_0 = arith.constant 0 : i32
    %c0_i32_1 = arith.constant 0 : i32
    return %c0_i32, %c0_i32_0 : i32, i32
  }
  func.func @transform_8(%arg0: i32, %arg1: i32) -> (i32, i32, i32, i32) {
    %c0_i32 = arith.constant 0 : i32
    %c0_i32_0 = arith.constant 0 : i32
    %c0_i32_1 = arith.constant 0 : i32
    return %arg0, %arg1, %c0_i32, %c0_i32_0 : i32, i32, i32, i32
  }
}

</mosaic_0001>

<bundles_post_ra>
// kernel: tpu_custom_call.1
= control target key start
LH: loop header
LB: loop body
LE: loop exit
PB: predicated region body
PF: predicated region fallthrough
CT: control target
= control target key end

     0   :  { %s1803_s0 = inlined_call_operand.vmem [shape: f32[4,12,16], index: 0, kind: input, shape index: {}]   ;;  %s1804_s1 = inlined_call_operand.hbm [shape: f32[2,16,64], index: 1, kind: input, shape index: {}]   ;;  %s1805_s2 = inlined_call_operand.vmem [shape: bf16[3,64,128], index: 2, kind: input, shape index: {}]   ;;  %s1806_s3 = inlined_call_operand.vmem [shape: f32[1,128], index: 3, kind: input, shape index: {}]   ;;  %s1807_s4 = inlined_call_operand.vmem [shape: f32[1,128], index: 4, kind: input, shape index: {}]   ;;  %s1808_s5 = inlined_call_operand.hbm [shape: bf16[3,128,128], index: 5, kind: input, shape index: {}]   ;;  %s1809_s6 = inlined_call_operand.vmem [shape: f32[1,128], index: 6, kind: input, shape index: {}]   ;;  %s1810_s7 = inlined_call_operand.vmem [shape: f32[1,128], index: 7, kind: input, shape index: {}]   ;;  %s1811_s8 = inlined_call_operand.hbm [shape: f32[2,4,8,128], index: 8, kind: output, shape index: {}]  }
   0x1   :  { %1821 = sst [smem:[#allocation19_spill]] %s1807_s4 }
   0x2   :  { %1822 = sst [smem:[#allocation20_spill]] %s1808_s5 }
   0x3   :  { %1823 = sst [smem:[#allocation21_spill]] %s1809_s6 }
   0x4   :  { %1824 = sst [smem:[#allocation22_spill]] %s1810_s7 }
   0x5   :  { %1825 = sst [smem:[#allocation23_spill]] %s1811_s8 }
   0x6   :  { %13 = vsyncpa [#allocation3], 0 }
   0x7   :  { %15 = vsyncpa [#allocation3 + $0x1], 0 }
   0x8   :  { %16 = vsyncpa [#allocation6], 0 }
   0x9   :  { %17 = vsyncpa [#allocation4], 0 }
   0xa   :  { %19 = vsyncpa [#allocation4 + $0x1], 0  ;;  %s1559_s27 = smov 0   ;;  %s1561_s28 = smov 0  }
   0xb   :  { %s1563_s29 = smov 0   ;;  %s1565_s30 = smov 0  }
   0xc   :  { %s1567_s9 = smov 0   ;;  %s1569_s10 = smov 0  }
   0xd   :  { %s1571_s11 = smov 0   ;;  %s1573_s12 = smov 0  }
   0xe   :  { %s1575_s13 = smov 0   ;;  %s1577_s14 = smov 0  }
   0xf   :  { %s1579_s15 = smov 0  }
  0x10 LB: > { %1826 = sst [smem:[#allocation11_spill]] %s1467_s27  ;;  %s978_s16 = sadd.s32 4294967295, %s1507_s15   ;;  %s1507_s15 = sphi %s1579_s15, %s25_s15   ;;  %s1503_s14 = sphi %s1577_s14, %s1860_s14   ;;  %s1499_s13 = sphi %s1575_s13, %s1852_s13   ;;  %s1495_s12 = sphi %s1573_s12, %s1859_s12   ;;  %s1491_s11 = sphi %s1571_s11, %s1851_s11   ;;  %s1487_s10 = sphi %s1569_s10, %s1858_s10   ;;  %s1483_s9 = sphi %s1567_s9, %s1857_s9   ;;  %s1479_s30 = sphi %s1565_s30, %s1856_s30   ;;  %s1475_s29 = sphi %s1563_s29, %s1855_s29   ;;  %s1471_s28 = sphi %s1561_s28, %s1854_s28   ;;  %s1467_s27 = sphi %s1559_s27, %s1850_s27  }
  0x11   : > { %1827 = sst [smem:[#allocation12_spill]] %s1471_s28  ;;  %s979_s17 = sadd.s32 4294967294, %s1507_s15  }
  0x12   : > { %1828 = sst [smem:[#allocation13_spill]] %s1495_s12  ;;  %p83_p0 = scmp.ne.s32.totalorder %s1483_s9, %s1479_s30 }
  0x13   : > { %1829 = sst [smem:[#allocation14_spill]] %s1499_s13  ;;  %p1615_p1 = scmp.eq.s32.totalorder %s978_s16, 0 }
  0x14   : > { %p234_p2 = scmp.ne.s32.totalorder %s1475_s29, %s1471_s28  ;;  %p235_p3 = scmp.eq.s32.totalorder %s978_s16, 7 }
  0x15   : > { %p1623_p4 = por %p1615_p1, %p83_p0  ;;  %p240_p5 = scmp.ne.s32.totalorder %s1471_s28, %s1467_s27 }
  0x16   : > { %p1629_p6 = por %p235_p3, %p234_p2  ;;  %p241_p7 = scmp.eq.s32.totalorder %s979_s17, 7 }
  0x17   : > { %p980_p8 = scmp.ge.s32.totalorder %s1507_s15, 1  ;;  %p248_p9 = scmp.lt.s32.totalorder %s1507_s15, 9 }
  0x18   : > { %s1832_s20 = scalar_select %p1629_p6, 1, 0 }
  0x19   : > { %p1635_p10 = por %p241_p7, %p240_p5  ;;  %p1639_p11 = pnand %p980_p8, %p248_p9 }
  0x1a   : > { %1833 = sst [smem:[#allocation15_spill]] %s1832_s20  ;;  %s1509_s26 = smov [#allocation5]  }
  0x1b   : > { %s1834_s21 = scalar_select %p1635_p10, 1, 0 }
  0x1c   : > { %s1837_s5 = sld [smem:[#allocation20_spill]]  ;;  %p1208_p12 = pneg %p1639_p11 }
  0x1d   : > { %1835 = sst [smem:[#allocation16_spill]] %s1834_s21  ;;  %s270_s30 = sshll.u32 %s1509_s26, 4  ;;  %s271_s30 = int_to_ptr.vmem [resolvable:$true] %s270_s30 }
  0x1e   : > { %p1209_p13 = pnand %p1208_p12, %p1615_p1  ;;  %s1510_s16 = smov 64  }
  0x1f   : > { %s1511_s17 = smov 4   ;;  %s34_s23 = sadd.s32 1, %s1499_s13 }
  0x20   : > { %s37_s24 = sadd.s32 1, %s1503_s14  ;;  %p35_p0 = scmp.ge.s32.totalorder %s34_s23, 4 }
  0x21   : > { %p77_p2 = scmp.ne.s32.totalorder %s1487_s10, %s1483_s9  ;;  %p78_p3 = scmp.eq.s32.totalorder %s1507_s15, 0 }
  0x22   : > { %s268_s25 = sshll.u32 %s1837_s5, 4  ;;  %s70_s5 = sadd.s32 1, %s1487_s10  ;;  %s269_s25 = int_to_ptr.hbm [resolvable:$true] %s268_s25 }
  0x23   : > { %1211 = dma.hbm_to_vmem [thread:$0]  (!%p1209_p13), %s269_s25, 3072, %s271_s30, [#allocation6], %s1510_s16, %s1510_s16, %s1511_s17  }
  0x24   : > { %s1862_s23 = smov (%p35_p0, %s34_s23), 0  ;;  %s1864_s24 = smov (!%p35_p0, %s37_s24), %s1503_s14 }
  0x25   : > { %1838 = sst [smem:[#allocation17_spill]] %s1862_s23  ;;  %p1659_p5 = por %p78_p3, %p77_p2 }
  0x26   : > { %s220_s21 = ssub.s32 %s1499_s13, %s1862_s23  ;;  %p39_p7 = scmp.ge.s32.totalorder %s1864_s24, 2 }
  0x27   : > { %s224_s25 = sadd.s32 1, %s1475_s29  ;;  %p1221_p8 = scmp.lt.s32.totalorder %s1507_s15, 8 }
  0x28   : > { %s298_s30 = sand.u32 1, %s1487_s10   ;;  %s1866_s24 = smov (%p39_p7, %s1864_s24), 0 }
  0x29   : > { %1840 = sst [smem:[#allocation18_spill]] %s1866_s24  ;;  %s983_s16 = sshll.u32 %s298_s30, 4 }
  0x2a   : > { %s67_s17 = ssub.s32 %s1503_s14, %s1866_s24  ;;  %s1162_s20 = sshll.u32 %s1503_s14, 4 }
  0x2b   : > { %p68_p9 = scmp.eq.s32.totalorder %s67_s17, 0  ;;  %s221_s27 = sor.u32 %s220_s21, %s67_s17 }
  0x2c   : > { %p222_p12 = scmp.eq.s32.totalorder %s221_s27, 0  ;;  %s307_s6 = scalar_lea.hbm %s1804_s1, %s1162_s20 }
  0x2d   : > { %s1674_s8 = scalar_select %p68_p9, %s1487_s10, %s70_s5  }
  0x2e   : > { %s1677_s7 = scalar_select %p222_p12, %s1475_s29, %s224_s25  }
  0x2f   : > { %s302_s28 = scalar_lea.vmem [#allocation2], %s983_s16  ;;  %s308_s4 = sshll.u32 %s307_s6, 4  ;;  %s309_s4 = int_to_ptr.hbm [resolvable:$true] %s308_s4 }
  0x30   : > { %s310_s12 = sshll.u32 %s302_s28, 4  ;;  %p1213_p13 = pnand %p1221_p8, %p1659_p5  ;;  %s311_s12 = int_to_ptr.vmem [resolvable:$true] %s310_s12 }
  0x31   : > { %s299_s24 = scalar_lea.sflag [#allocation3], %s298_s30  ;;  %s1512_s21 = smov 128  }
  0x32   : > { %s1513_s27 = smov 8   ;;  %322 = sbr.rel (%p1639_p11) target bundleno = 526 (0x20e), region = 52 }
  0x33   : > { %1215 = dma.hbm_to_vmem [thread:$0]  (!%p1213_p13), %s309_s4, 256, %s311_s12, %s299_s24, %s1512_s21, %s1512_s21, %s1513_s27  }
  0x34   : > { %s324_s5 = sand.u32 (!%p1639_p11), 1, %s1483_s9  }
  0x35   : > { %s987_s13 = sshll.u32 (!%p1639_p11), %s324_s5, 4  ;;  %s325_s20 = scalar_lea.sflag (!%p1639_p11), [#allocation3], %s324_s5 }
  0x36   : > { %s328_s23 = scalar_lea.vmem (!%p1639_p11), [#allocation2], %s987_s13 }
  0x37   : > { %1454 = dma.done.wait (%p1623_p4), %s325_s20, 256  }
  0x38   : > { %1456 = vsyncadd (%p1623_p4), %s325_s20, 4294967040 }
  0x39   : > { %1458 = dma.done.wait (%p1615_p1), [#allocation6], 3072  }
  0x3a   : > { %1460 = vsyncadd (%p1615_p1), [#allocation6], 4294964224  ;;  %p372_p11 = scmp.lt.s32.totalorder %s1491_s11, 3  ;;  %v381_v0 = vld [vmem:[%s328_s23 + $0x8] sm:$0xff]  ;;  %v380_v1 = vld [vmem:[%s328_s23] sm:$0xff]  ;;  %vm382_vm0 = vcmask 130048  }
  0x3b   : > { %403 = vmatpush.msra.mxu0 %v381_v0  ;;  %v1167_v4 = vld [vmem:[%s1805_s2 + $0x18] sm:$0xff]  ;;  %v1166_v5 = vld [vmem:[%s1805_s2 + $0x10] sm:$0xff]  ;;  %v1165_v7 = vld [vmem:[%s1805_s2 + $0x8] sm:$0xff]  ;;  %vm467_vm1 = vcmask 523264   ;;  %s1841_s27 = sld [smem:[#allocation19_spill]] }
  0x3c   : > { %s373_s4 = scalar_select %p372_p11, %s1491_s11, 3  ;;  %515 = vmatpush.bf16.msra.mxu2 %v1167_v4  ;;  %v1171_v6 = vld [vmem:[%s1805_s2 + $0x38] sm:$0xff]  ;;  %v1170_v8 = vld [vmem:[%s1805_s2 + $0x30] sm:$0xff]  ;;  %v1164_v9 = vld [vmem:[%s1805_s2] sm:$0xff] }
  0x3d   : > { %404 = vmatpush.msra.mxu0 %v380_v1  ;;  %475 = vmatpush.bf16.msra.mxu3 %v1171_v6  ;;  %v1169_v10 = vld [vmem:[%s1805_s2 + $0x28] sm:$0xff]  ;;  %v1168_v11 = vld [vmem:[%s1805_s2 + $0x20] sm:$0xff]  ;;  %v1175_v12 = vld [vmem:[%s1805_s2 + $0x58] sm:$0xff]  ;;  %s1842_s5 = sld [smem:[#allocation13_spill]] }
  0x3e   : > { %s1163_s6 = sshll.u32 %s373_s4, 4  ;;  %v1174_v13 = vld [vmem:[%s1805_s2 + $0x50] sm:$0xff]  ;;  %v1173_v14 = vld [vmem:[%s1805_s2 + $0x48] sm:$0xff]  ;;  %v1172_v15 = vld [vmem:[%s1805_s2 + $0x40] sm:$0xff]  ;;  %s1843_s13 = sld [smem:[#allocation12_spill]] }
  0x3f   : > { %s376_s22 = scalar_lea.vmem %s1803_s0, %s1163_s6  ;;  %v1183_v28 = vld [vmem:[#allocation5 + $0x38] sm:$0xff]  ;;  %v1182_v29 = vld [vmem:[#allocation5 + $0x30] sm:$0xff]  ;;  %v1181_v30 = vld [vmem:[#allocation5 + $0x28] sm:$0xff]  ;;  %s1844_s18 = sld [smem:[#allocation21_spill]] }
  0x40   : > { %v378_v2 = vld [vmem:[%s376_s22] sm:$0xff]  ;;  %v379_v3 = vld [vmem:[%s376_s22 + $0x8] sm:$0xf]  ;;  %516 = vmatpush.bf16.msra.mxu2 %v1166_v5  ;;  %749 = vmatpush.bf16.msra.mxu1 %v1183_v28  ;;  %v1199_v32 = vld [vmem:[#allocation5 + $0xb8] sm:$0xff]  ;;  %s1845_s26 = sld [smem:[#allocation22_spill]] }
  0x41   : > { %992 = vmatmul.msk.f32.vlgmr.msra.gmra.mxu0 %vm382_vm0, %v378_v2  ;;  %476 = vmatpush.bf16.msra.mxu3 %v1170_v8  ;;  %v1180_v31 = vld [vmem:[#allocation5 + $0x20] sm:$0xff]  ;;  %v1179_v33 = vld [vmem:[#allocation5 + $0x18] sm:$0xff]  ;;  %v1198_v35 = vld [vmem:[#allocation5 + $0xb0] sm:$0xff]  ;;  %s1846_s16 = sld [smem:[#allocation23_spill]] }
  0x42   : > { %v1191_v34 = vld [vmem:[#allocation5 + $0x78] sm:$0xff]  ;;  %v1178_v36 = vld [vmem:[#allocation5 + $0x10] sm:$0xff]  ;;  %v1197_v38 = vld [vmem:[#allocation5 + $0xa8] sm:$0xff] }
  0x43   : > { %688 = vmatpush.bf16.msrb.mxu0 %v1191_v34  ;;  %v1190_v37 = vld [vmem:[#allocation5 + $0x70] sm:$0xff]  ;;  %v1177_v39 = vld [vmem:[#allocation5 + $0x8] sm:$0xff]  ;;  %v1196_v41 = vld [vmem:[#allocation5 + $0xa0] sm:$0xff]  ;;  %s1158_s20 = sshll.u32 %s1842_s5, 2 }
  0x44   : > { %517 = vmatpush.bf16.msra.mxu2 %v1165_v7  ;;  %750 = vmatpush.bf16.msra.mxu1 %v1182_v29  ;;  %v1189_v40 = vld [vmem:[#allocation5 + $0x68] sm:$0xff]  ;;  %v1176_v42 = vld [vmem:[#allocation5] sm:$0xff]  ;;  %v1195_v44 = vld [vmem:[#allocation5 + $0x98] sm:$0xff]  ;;  %s369_s23 = sand.u32 1, %s1843_s13   ;;  %s866_s4 = sadd.s32 %s1491_s11, %s1158_s20 }
  0x45   : > { %477 = vmatpush.bf16.msra.mxu3 %v1169_v10  ;;  %v1188_v43 = vld [vmem:[#allocation5 + $0x60] sm:$0xff]  ;;  %v1187_v45 = vld [vmem:[#allocation5 + $0x58] sm:$0xff]  ;;  %v1194_v46 = vld [vmem:[#allocation5 + $0x90] sm:$0xff]  ;;  %s989_s6 = sshll.u32 %s369_s23, 3  ;;  %s1159_s28 = sshll.u32 %s866_s4, 3 }
  0x46   : > { %v1186_v48 = vld [vmem:[#allocation5 + $0x50] sm:$0xff]  ;;  %v1193_v49 = vld [vmem:[#allocation5 + $0x88] sm:$0xff]  ;;  %v1192_v51 = vld [vmem:[#allocation5 + $0x80] sm:$0xff]  ;;  %s371_s21 = scalar_lea.vmem [#allocation7], %s989_s6  ;;  %s856_s13 = scalar_lea.sflag [#allocation4], %s369_s23 }
  0x47   : > { %689 = vmatpush.bf16.msrb.mxu0 %v1190_v37  ;;  %v1185_v50 = vld [vmem:[#allocation5 + $0x48] sm:$0xff]  ;;  %v1184_v53 = vld [vmem:[#allocation5 + $0x40] sm:$0xff]  ;;  %s868_s17 = scalar_lea.hbm %s1846_s16, %s1159_s28  ;;  %s1401_s6 = scalar_lea.hbm %s1846_s16, 64 }
  0x48   : > { %518 = vmatpush.bf16.msra.mxu2 %v1164_v9  ;;  %751 = vmatpush.bf16.msra.mxu1 %v1181_v30  ;;  %v1317_v56 = vld [vmem:[%s1806_s3] ss:$0 sm:$0xff]  ;;  %s872_s5 = sshll.u32 %s868_s17, 4  ;;  %s873_s5 = int_to_ptr.hbm [resolvable:$true] %s872_s5 }
  0x49   : > { %993 = vmatmul.msk.f32.gmra.mxu0 %vm382_vm0, %v379_v3  ;;  %478 = vmatpush.bf16.msra.mxu3 %v1168_v11  ;;  %v1318_v59 = vld [vmem:[%s1841_s27] ss:$0 sm:$0xff]  ;;  %s870_s27 = sshll.u32 %s371_s21, 4  ;;  %s1395_s20 = sshra.s32 %s873_s5, 4  ;;  %s871_s27 = int_to_ptr.vmem [resolvable:$true] %s870_s27  ;;  %s1396_s20 = int_to_ptr.hbm [resolvable:$true] %s1395_s20 }
  0x4a   : > { %s1397_s4 = scalar_lea.hbm %s1396_s20, 8  ;;  %p1402_p2 = scmp.lt.s32.totalorder %s1396_s20, %s1846_s16 }
  0x4b   : > { %690 = vmatpush.bf16.msrb.mxu0 %v1189_v40  ;;  %p1398_p1 = scmp.ne.s32.totalorder %s1396_s20, %s1397_s4  ;;  %p1403_p3 = scmp.lt.s32.totalorder %s1401_s6, %s1397_s4 }
  0x4c   : > { %752 = vmatpush.bf16.msra.mxu1 %v1180_v31  ;;  %829 = vmatpush.bf16.msrb.mxu2 %v1199_v32 }
  0x4d   : > { %566 = vmatpush.bf16.msrb.mxu3 %v1175_v12  ;;  %p1399_p4 = pnand %p1398_p1, %p1629_p6  ;;  %p1404_p5 = por %p1403_p3, %p1402_p2 }
  0x4f   : > { %691 = vmatpush.bf16.msrb.mxu0 %v1188_v43  ;;  %p1400_p0 = pneg %p1399_p4 }
  0x50   : > { %753 = vmatpush.bf16.msra.mxu1 %v1179_v33  ;;  %830 = vmatpush.bf16.msrb.mxu2 %v1198_v35 }
  0x51   : > { %567 = vmatpush.bf16.msrb.mxu3 %v1174_v13  ;;  %p1405_p7 = pnand %p1404_p5, %p1400_p0 }
  0x53   : > { %692 = vmatpush.bf16.msrb.mxu0 %v1187_v45 }
  0x54   : > { %754 = vmatpush.bf16.msra.mxu1 %v1178_v36  ;;  %831 = vmatpush.bf16.msrb.mxu2 %v1197_v38 }
  0x55   : > { %568 = vmatpush.bf16.msrb.mxu3 %v1173_v14 }
  0x57   : > { %693 = vmatpush.bf16.msrb.mxu0 %v1186_v48 }
  0x58   : > { %755 = vmatpush.bf16.msra.mxu1 %v1177_v39  ;;  %832 = vmatpush.bf16.msrb.mxu2 %v1196_v41 }
  0x59   : > { %569 = vmatpush.bf16.msrb.mxu3 %v1172_v15 }
  0x5b   : > { %694 = vmatpush.bf16.msrb.mxu0 %v1185_v50 }
  0x5c   : > { %756 = vmatpush.bf16.msra.mxu1 %v1176_v42  ;;  %833 = vmatpush.bf16.msrb.mxu2 %v1195_v44 }
  0x5f   : > { %695 = vmatpush.bf16.msrb.mxu0 %v1184_v53 }
  0x60   : > { %834 = vmatpush.bf16.msrb.mxu2 %v1194_v46 }
  0x64   : > { %835 = vmatpush.bf16.msrb.mxu2 %v1193_v49 }
  0x68   : > { %836 = vmatpush.bf16.msrb.mxu2 %v1192_v51 }
  0xbe   : > { %v406_v16 = vpop.f32.mrf.mxu0 }
  0xbf   : > { %v412_v17 = vpack.c.bf16 %v406_v16, %v406_v16 }
  0xc1   : > { %v433_v20 = vunpack.c.l.b16 %v412_v17 }
  0xc6   : > { %v409_v18 = vpop.f32.mrf.mxu0 }
  0xc7   : > { %v413_v19 = vpack.c.bf16 %v409_v18, %v409_v18 }
  0xc9   : > { %v434_v21 = vunpack.c.l.b16 %v413_v19 }
  0xcb   : > { %v435_v22 = vpack.c.b16 %v434_v21, %v433_v20  ;;  %v1319_v20 = vld [vmem:[%s1844_s18] ss:$0 sm:$0xff] }
  0xcd   : > { %1035 = vmatmul.msk.bf16.vlgmr.msra.gmra.mxu2 %vm467_vm1, %v435_v22  ;;  %v439_v23 = vshll.u32 %v435_v22, 16  ;;  %v437_v24 = vshrl.u32 %v435_v22, 16  ;;  %v534_v27 = vrot.slane %v435_v22, 1 }
  0xcf   : > { %v441_v25 = vrot.slane %v439_v23, 1  ;;  %v1320_v23 = vld [vmem:[%s1845_s26] ss:$0 sm:$0xff] }
  0xd1   : > { %v442_v26 = vor.u32 %v441_v25, %v437_v24 }
  0xd3   : > { %1018 = vmatmul.msk.bf16.vlgmr.msra.gmra.mxu3 %vm467_vm1, %v442_v26 }
  0xe3   : > { %1060 = vmatmul.msk.bf16.vlgmr.msrb.gmra.mxu3 %vm467_vm1, %v534_v27 }
 0x150   : > { %v520_v54 = vpop.f32.mrf.mxu2 }
 0x156   : > { %v480_v47 = vpop.f32.mrf.mxu3 }
 0x157   : > { %v521_v55 = vadd.f32 %v520_v54, %v480_v47 }
 0x158   : > { %v522_v62 = vpop.f32.mrf.mxu2 }
 0x15e   : > { %v482_v52 = vpop.f32.mrf.mxu3 }
 0x15f   : > { %v523_v63 = vadd.f32 %v522_v62, %v482_v52 }
 0x166   : > { %v571_v57 = vpop.f32.mrf.mxu3 }
 0x167   : > { %v576_v58 = vadd.f32 %v571_v57, %v521_v55 }
 0x169   : > { %v582_v60 = vmul.f32 %v1317_v56, %v576_v58 }
 0x16b   : > { %v588_v61 = vadd.f32 %v1318_v59, %v582_v60 }
 0x16d   : > { %v590_v0 = vmax.f32 %v588_v61, 0.0 }
 0x16e   : > { %v573_v1 = vpop.f32.mrf.mxu3 }
 0x16f   : > { %v577_v2 = vadd.f32 %v573_v1, %v523_v63  ;;  %v592_v3 = vpack.c.bf16 %v590_v0, %v590_v0 }
 0x171   : > { %v583_v4 = vmul.f32 %v1317_v56, %v577_v2  ;;  %757 = vmatmul.bf16.vlgmr.msra.gmra.mxu1 %v592_v3  ;;  %v629_v9 = vunpack.c.l.b16 %v592_v3 }
 0x173   : > { %v589_v5 = vadd.f32 %v1318_v59, %v583_v4 }
 0x175   : > { %v591_v6 = vmax.f32 %v589_v5, 0.0 }
 0x177   : > { %v593_v7 = vpack.c.bf16 %v591_v6, %v591_v6 }
 0x179   : > { %v630_v8 = vunpack.c.l.b16 %v593_v7 }
 0x17b   : > { %v631_v10 = vpack.c.b16 %v630_v8, %v629_v9 }
 0x17d   : > { %v779_v11 = vrot.slane %v631_v10, 1  ;;  %v635_v12 = vshll.u32 %v631_v10, 16  ;;  %v633_v13 = vshrl.u32 %v631_v10, 16 }
 0x17f   : > { %837 = vmatmul.bf16.vlgmr.msrb.gmra.mxu2 %v779_v11  ;;  %v637_v14 = vrot.slane %v635_v12, 1 }
 0x181   : > { %v638_v15 = vor.u32 %v637_v14, %v633_v13 }
 0x183   : > { %696 = vmatmul.bf16.vlgmr.msrb.gmra.mxu0 %v638_v15 }
 0x1ee   : > { %v758_v16 = vpop.f32.mrf.mxu1 }
 0x1f6   : > { %v760_v17 = vpop.f32.mrf.mxu1 }
 0x200   : > { %v697_v18 = vpop.f32.mrf.mxu0 }
 0x201   : > { %v759_v19 = vadd.f32 %v758_v16, %v697_v18 }
 0x202   : > { %v838_v21 = vpop.f32.mrf.mxu2 }
 0x203   : > { %v842_v22 = vadd.f32 %v838_v21, %v759_v19 }
 0x205   : > { %v847_v24 = vmul.f32 %v1319_v20, %v842_v22 }
 0x207   : > { %v852_v25 = vadd.f32 %v1320_v23, %v847_v24 }
 0x208   : > { %v699_v26 = vpop.f32.mrf.mxu0 }
 0x209   : > { %v853_v27 = vmax.f32 %v852_v25, 0.0 }
 0x20a   : > { %v840_v28 = vpop.f32.mrf.mxu2 }
 0x20b   : > { %854 = vst [vmem:[%s371_s21] sm:$0xff] %v853_v27 }
 0x20c   : > { %1408 = shalt.err (!%p1405_p7)
}
 0x20d   : > { %1206 = dma.vmem_to_hbm [thread:$0]  (%p1629_p6), %s871_s27, 128, %s873_s5, %s856_s13  }
 0x20e PF: > { %s1848_s23 = sld [smem:[#allocation11_spill]]  ;;  %p1223_p8 = scmp.ge.s32.totalorder %s1507_s15, 2 }
 0x210   : > { %p1217_p9 = pnand %p1223_p8, %p1635_p10 }
 0x212   : > { %p1218_p12 = pneg %p1217_p9 }
 0x214   : > { %s884_s24 = sand.u32 1, %s1848_s23  }
 0x215   : > { %s885_s26 = scalar_lea.sflag [#allocation4], %s884_s24 }
 0x216   : > { %1462 = dma.done.wait (%p1218_p12), %s885_s26, 128  }
 0x217   : > { %1464 = vsyncadd (%p1218_p12), %s885_s26, 4294967168  ;;  %s25_s15 = sadd.s32 1, %s1507_s15   ;;  %s1850_s27 = sld [smem:[#allocation12_spill]] }
 0x218   : > { %p22_p13 = scmp.ge.s32.totalorder %s25_s15, 10   ;;  %s1851_s11 = sld [smem:[#allocation14_spill]] }
 0x219   : > { %s1852_s13 = sld [smem:[#allocation17_spill]]  ;;  %s1854_s28 = smov %s1475_s29 }
 0x21a   : > { %s1853_s25 = sld [smem:[#allocation18_spill]]  ;;  %s1855_s29 = smov %s1677_s7 }
 0x21b   : > { %s1856_s30 = smov %s1483_s9  ;;  %s1857_s9 = smov %s1487_s10 }
 0x21c   : > { %s1858_s10 = smov %s1674_s8  ;;  %s1859_s12 = smov %s1503_s14 }
 0x21d   :  { %24 = sbr.rel (!%p22_p13) target bundleno = 16 (0x10), region = 108 }
 0x220   : > { %s1860_s14 = smov %s1853_s25 }
 0x222   :  { %891 = vsyncpa [#allocation3], 1 }
 0x223   :  { %893 = vsyncpa [#allocation3 + $0x1], 1 }
 0x224   :  { %894 = vsyncpa [#allocation6], 1 }
 0x225   :  { %895 = vsyncpa [#allocation4], 1 }
 0x226   :  { %897 = vsyncpa [#allocation4 + $0x1], 1 }

</bundles_post_ra>
